<compile_context>
chip_gen: v7x
topology: tpu7x:2x2x1
jax: 0.10.0
libtpu: 0.0.40
codegen_flags: <defaults>
</compile_context>

<pallas_src>
import jax
import jax.numpy as jnp
from jax.experimental import pallas as pl
from jax.experimental.pallas import tpu as pltpu


def _make_pep_attention_kernel(B, L, D, W):
    """Build the kernel for static shapes (B, L, D) with packed output width W."""
    # Shape-derived, trace-time static choice: MXU for the logits contraction
    # only once the shapes stop being degenerate.
    use_mxu = (D >= 128) or (B >= 64)

    def kernel(lstm_out_ref, a_ref, b_ref, pep_ref, mask_ref, w_ref, bias_ref,
               out_ref):
        # 1) sum of the three hidden states (two VPU adds)            [B, D]
        h = a_ref[...] + b_ref[...] + pep_ref[...]

        # 2) InstanceNorm1d on the [B, 1, D] view == per-row normalization
        #    over the feature axis, biased variance, eps=1e-5, no affine.
        mean = jnp.mean(h, axis=-1, keepdims=True)
        centered = h - mean
        var = jnp.mean(centered * centered, axis=-1, keepdims=True)
        h_norm = centered * jax.lax.rsqrt(var + 1e-5)

        # 3) Linear: logits[b, l] = sum_d h_norm[b, d] * W[l, d] + bias[l]
        bias = bias_ref[...]                                          # [1, L]
        if use_mxu:
            logits = jnp.dot(h_norm, w_ref[...].T,
                             preferred_element_type=jnp.float32) + bias
        else:
            # Broadcast multiply + lane reduce on the VPU/XLU; cheaper than an
            # MXU push/pop at [2, 8, 32].
            logits = jnp.sum(h_norm[:, None, :] * w_ref[...][None, :, :],
                             axis=-1) + bias                           # [B, L]

        # 4) mask: where(seq_mask != 0, logits, 0)  (exactly as torch module)
        logits = jnp.where(mask_ref[...] != 0.0, logits, 0.0)

        # 5) softmax over L; plain divide (nothing saturates at B*L = 16).
        m = jnp.max(logits, axis=-1, keepdims=True)
        e = jnp.exp(logits - m)
        attn = e / jnp.sum(e, axis=-1, keepdims=True)                  # [B, L]

        # 6) context[b, d] = sum_l attn[b, l] * lstm_out[b, l, d]
        #    Broadcast multiply + sublane reduce.                      [B, D]
        # TODO(synk): at production scale, tile over L and replace this with
        #   per-tile MXU dots instead of materializing the [B,L,D] broadcast.
        context = jnp.sum(attn[:, :, None] * lstm_out_ref[...], axis=1)

        # 7) One lane-dense packed store: [context | attn | zero pad] -> [B,W]
        parts = [context, attn]
        pad = W - D - L
        if pad > 0:
            parts.append(jnp.zeros((B, pad), jnp.float32))
        out_ref[...] = jnp.concatenate(parts, axis=-1)

    return kernel


def pep_attention(lstm_out, a_hidden, b_hidden, pep_hidden, seq_mask, fc_w, fc_b):
    B, L, D = lstm_out.shape
    assert fc_w.shape == (L, D)
    fc_b2 = fc_b.reshape(1, L)

    # Packed output width: lane-dense (multiple of 128, >= D + L).
    W = max(128, pl.cdiv(D + L, 128) * 128)

    vmem = pl.BlockSpec(memory_space=pltpu.MemorySpace.VMEM)
    packed = pl.pallas_call(
        _make_pep_attention_kernel(B, L, D, W),
        out_shape=jax.ShapeDtypeStruct((B, W), jnp.float32),
        in_specs=[vmem] * 7,
        out_specs=vmem,
    )(lstm_out, a_hidden, b_hidden, pep_hidden, seq_mask, fc_w, fc_b2)

    # Cheap static slices in the wrapper (per perf review: keep the kernel's
    # store lane-dense, split outside).
    out = packed[:, :D]
    attn = packed[:, D:D + L]
    return out, attn


def reference(lstm_out, a_hidden, b_hidden, pep_hidden, seq_mask, fc_w, fc_b):
    h = a_hidden + b_hidden + pep_hidden
    mean = jnp.mean(h, axis=-1, keepdims=True)
    var = jnp.mean((h - mean) ** 2, axis=-1, keepdims=True)
    h_norm = (h - mean) / jnp.sqrt(var + 1e-5)
    logits = h_norm @ fc_w.T + fc_b
    logits = jnp.where(seq_mask != 0.0, logits, 0.0)
    attn = jax.nn.softmax(logits, axis=-1)
    out = jnp.einsum('bl,bld->bd', attn, lstm_out)
    return out, attn


if __name__ == "__main__":
    B, L, H = 2, 8, 16          # max_seq_length=8, hidden_size=16 -> 2H=32
    D = 2 * H

    key = jax.random.PRNGKey(0)
    k = jax.random.split(key, 7)
    lstm_out = jax.random.normal(k[0], (B, L, D), dtype=jnp.float32)
    a_hidden = jax.random.normal(k[1], (B, D), dtype=jnp.float32)
    b_hidden = jax.random.normal(k[2], (B, D), dtype=jnp.float32)
    pep_hidden = jax.random.normal(k[3], (B, D), dtype=jnp.float32)
    # seq_mask: 1.0 for valid positions, 0.0 for padding
    seq_mask = (jax.random.uniform(k[4], (B, L)) > 0.3).astype(jnp.float32)

    # nn.Linear(2H, L): weight [L, 2H], bias [L] (kept as [1, L])
    bound = 1.0 / jnp.sqrt(jnp.float32(D))
    fc_w = jax.random.uniform(k[5], (L, D), minval=-bound, maxval=bound,
                              dtype=jnp.float32)
    fc_b = jax.random.uniform(k[6], (1, L), minval=-bound, maxval=bound,
                              dtype=jnp.float32)

    out, attn = pep_attention(lstm_out, a_hidden, b_hidden, pep_hidden,
                              seq_mask, fc_w, fc_b)
    jax.block_until_ready((out, attn))

    ref_out, ref_attn = reference(lstm_out, a_hidden, b_hidden, pep_hidden,
                                  seq_mask, fc_w, fc_b)
    assert out.shape == (B, D) and attn.shape == (B, L)
    assert jnp.allclose(out, ref_out, atol=1e-5, rtol=1e-5)
    assert jnp.allclose(attn, ref_attn, atol=1e-5, rtol=1e-5)
    print("KERNEL_OK")
</pallas_src>

<mosaic_0001>
module attributes {stable_mosaic.version = 11 : i64} {
  func.func @kernel(%arg0: memref<2x8x32xf32, #tpu.memory_space<vmem>>, %arg1: memref<2x32xf32, #tpu.memory_space<vmem>>, %arg2: memref<2x32xf32, #tpu.memory_space<vmem>>, %arg3: memref<2x32xf32, #tpu.memory_space<vmem>>, %arg4: memref<2x8xf32, #tpu.memory_space<vmem>>, %arg5: memref<8x32xf32, #tpu.memory_space<vmem>>, %arg6: memref<1x8xf32, #tpu.memory_space<vmem>>, %arg7: memref<2x128xf32, #tpu.memory_space<vmem>>) attributes {dimension_semantics = [], scalar_prefetch = 0 : i64, scratch_operands = 0 : i64, tpu.core_type = #tpu.core_type<tc>} {
    %c0 = arith.constant 0 : index
    %c0_0 = arith.constant 0 : index
    %0 = vector.load %arg1[%c0, %c0_0] : memref<2x32xf32, #tpu.memory_space<vmem>>, vector<2x32xf32>
    %c0_1 = arith.constant 0 : index
    %c0_2 = arith.constant 0 : index
    %1 = vector.load %arg2[%c0_1, %c0_2] : memref<2x32xf32, #tpu.memory_space<vmem>>, vector<2x32xf32>
    %2 = arith.addf %0, %1 : vector<2x32xf32>
    %c0_3 = arith.constant 0 : index
    %c0_4 = arith.constant 0 : index
    %3 = vector.load %arg3[%c0_3, %c0_4] : memref<2x32xf32, #tpu.memory_space<vmem>>, vector<2x32xf32>
    %4 = arith.addf %2, %3 : vector<2x32xf32>
    %cst = arith.constant dense<0.000000e+00> : vector<2xf32>
    %5 = vector.multi_reduction <add>, %4, %cst [1] : vector<2x32xf32> to vector<2xf32>
    %6 = vector.shape_cast %5 : vector<2xf32> to vector<2x1xf32>
    %cst_5 = arith.constant 3.200000e+01 : f32
    %7 = vector.broadcast %cst_5 : f32 to vector<2x1xf32>
    %8 = arith.divf %6, %7 : vector<2x1xf32>
    %9 = vector.broadcast %8 : vector<2x1xf32> to vector<2x32xf32>
    %10 = arith.subf %4, %9 : vector<2x32xf32>
    %11 = arith.mulf %10, %10 : vector<2x32xf32>
    %cst_6 = arith.constant dense<0.000000e+00> : vector<2xf32>
    %12 = vector.multi_reduction <add>, %11, %cst_6 [1] : vector<2x32xf32> to vector<2xf32>
    %13 = vector.shape_cast %12 : vector<2xf32> to vector<2x1xf32>
    %cst_7 = arith.constant 3.200000e+01 : f32
    %14 = vector.broadcast %cst_7 : f32 to vector<2x1xf32>
    %15 = arith.divf %13, %14 : vector<2x1xf32>
    %cst_8 = arith.constant 9.99999974E-6 : f32
    %16 = vector.broadcast %cst_8 : f32 to vector<2x1xf32>
    %17 = arith.addf %15, %16 : vector<2x1xf32>
    %18 = math.rsqrt %17 : vector<2x1xf32>
    %19 = vector.broadcast %18 : vector<2x1xf32> to vector<2x32xf32>
    %20 = arith.mulf %10, %19 : vector<2x32xf32>
    %c0_9 = arith.constant 0 : index
    %c0_10 = arith.constant 0 : index
    %21 = vector.load %arg6[%c0_9, %c0_10] : memref<1x8xf32, #tpu.memory_space<vmem>>, vector<1x8xf32>
    %22 = vector.shape_cast %20 : vector<2x32xf32> to vector<2x1x32xf32>
    %c0_11 = arith.constant 0 : index
    %c0_12 = arith.constant 0 : index
    %23 = vector.load %arg5[%c0_11, %c0_12] : memref<8x32xf32, #tpu.memory_space<vmem>>, vector<8x32xf32>
    %24 = vector.shape_cast %23 : vector<8x32xf32> to vector<1x8x32xf32>
    %25 = vector.broadcast %22 : vector<2x1x32xf32> to vector<2x8x32xf32>
    %26 = vector.broadcast %24 : vector<1x8x32xf32> to vector<2x8x32xf32>
    %27 = arith.mulf %25, %26 : vector<2x8x32xf32>
    %cst_13 = arith.constant dense<0.000000e+00> : vector<2x8xf32>
    %28 = vector.multi_reduction <add>, %27, %cst_13 [2] : vector<2x8x32xf32> to vector<2x8xf32>
    %29 = vector.broadcast %21 : vector<1x8xf32> to vector<2x8xf32>
    %30 = arith.addf %28, %29 : vector<2x8xf32>
    %c0_14 = arith.constant 0 : index
    %c0_15 = arith.constant 0 : index
    %31 = vector.load %arg4[%c0_14, %c0_15] : memref<2x8xf32, #tpu.memory_space<vmem>>, vector<2x8xf32>
    %cst_16 = arith.constant 0.000000e+00 : f32
    %32 = vector.broadcast %cst_16 : f32 to vector<2x8xf32>
    %33 = arith.cmpf one, %31, %32 : vector<2x8xf32>
    %cst_17 = arith.constant 0.000000e+00 : f32
    %34 = vector.broadcast %cst_17 : f32 to vector<2x8xf32>
    %35 = arith.select %33, %30, %34 : vector<2x8xi1>, vector<2x8xf32>
    %cst_18 = arith.constant dense<0xFF800000> : vector<2xf32>
    %36 = vector.multi_reduction <maximumf>, %35, %cst_18 [1] : vector<2x8xf32> to vector<2xf32>
    %37 = vector.shape_cast %36 : vector<2xf32> to vector<2x1xf32>
    %38 = vector.broadcast %37 : vector<2x1xf32> to vector<2x8xf32>
    %39 = arith.subf %35, %38 : vector<2x8xf32>
    %40 = math.exp %39 : vector<2x8xf32>
    %cst_19 = arith.constant dense<0.000000e+00> : vector<2xf32>
    %41 = vector.multi_reduction <add>, %40, %cst_19 [1] : vector<2x8xf32> to vector<2xf32>
    %42 = vector.shape_cast %41 : vector<2xf32> to vector<2x1xf32>
    %43 = vector.broadcast %42 : vector<2x1xf32> to vector<2x8xf32>
    %44 = arith.divf %40, %43 : vector<2x8xf32>
    %45 = vector.shape_cast %44 : vector<2x8xf32> to vector<2x8x1xf32>
    %c0_20 = arith.constant 0 : index
    %c0_21 = arith.constant 0 : index
    %c0_22 = arith.constant 0 : index
    %46 = vector.load %arg0[%c0_20, %c0_21, %c0_22] : memref<2x8x32xf32, #tpu.memory_space<vmem>>, vector<2x8x32xf32>
    %47 = vector.broadcast %45 : vector<2x8x1xf32> to vector<2x8x32xf32>
    %48 = arith.mulf %47, %46 : vector<2x8x32xf32>
    %cst_23 = arith.constant dense<0.000000e+00> : vector<2x32xf32>
    %49 = vector.multi_reduction <add>, %48, %cst_23 [1] : vector<2x8x32xf32> to vector<2x32xf32>
    %cst_24 = arith.constant 0.000000e+00 : f32
    %50 = vector.broadcast %cst_24 : f32 to vector<2x88xf32>
    %51 = tpu.concatenate %49, %44, %50 in 1 : vector<2x32xf32>, vector<2x8xf32>, vector<2x88xf32> -> vector<2x128xf32>
    %c0_25 = arith.constant 0 : index
    %c0_26 = arith.constant 0 : index
    %52 = vector.load %arg7[%c0_25, %c0_26] : memref<2x128xf32, #tpu.memory_space<vmem>>, vector<2x128xf32>
    tpu.vector_store %arg7[%c0_25, %c0_26], %51 {strides = array<i32>} : memref<2x128xf32, #tpu.memory_space<vmem>>, vector<2x128xf32>,
    return
  }
}

</mosaic_0001>

<bundles_post_ra>
// kernel: tpu_custom_call.1
= control target key start
LH: loop header
LB: loop body
LE: loop exit
PB: predicated region body
PF: predicated region fallthrough
CT: control target
= control target key end

     0   :  { %12 = vsyncpa [#allocation3], 0  ;;  %s419_s0 = inlined_call_operand.hbm [shape: f32[2,8,32], index: 0, kind: input, shape index: {}]   ;;  %s420_s1 = inlined_call_operand.vmem [shape: f32[2,32], index: 1, kind: input, shape index: {}]   ;;  %s421_s2 = inlined_call_operand.vmem [shape: f32[2,32], index: 2, kind: input, shape index: {}]   ;;  %s422_s3 = inlined_call_operand.vmem [shape: f32[2,32], index: 3, kind: input, shape index: {}]   ;;  %s423_s4 = inlined_call_operand.hbm [shape: f32[2,8], index: 4, kind: input, shape index: {}]   ;;  %s424_s5 = inlined_call_operand.vmem [shape: f32[8,32], index: 5, kind: input, shape index: {}]   ;;  %s425_s6 = inlined_call_operand.vmem [shape: f32[1,8], index: 6, kind: input, shape index: {}]   ;;  %s426_s7 = inlined_call_operand.hbm [shape: f32[2,128], index: 7, kind: output, shape index: {}]  }
   0x1   :  { %13 = vsyncpa [#allocation6], 0 }
   0x2   :  { %14 = vsyncpa [#allocation4], 0  ;;  %s313_s24 = smov [#allocation2]   ;;  %s241_s28 = scalar_lea.hbm %s419_s0, 256 }
   0x3   :  { %s20_s25 = sshll.u32 %s313_s24, 4  ;;  %p242_p0 = scmp.ne.s32.totalorder %s419_s0, %s241_s28  ;;  %s21_s25 = int_to_ptr.vmem [resolvable:$true] %s20_s25 }
   0x4   :  { %p245_p1 = scmp.lt.u32.totalorder %s241_s28, %s419_s0 }
   0x6   :  { %p247_p2 = pnand %p245_p1, %p242_p0 }
   0x8   :  { %250 = shalt.err (!%p247_p2)
}
   0x9   :  { %s251_s10 = scalar_lea.vmem %s21_s25, 256  ;;  %p256_p4 = scmp.lt.s32.totalorder %s21_s25, %s21_s25 }
   0xa   :  { %p252_p3 = scmp.ne.s32.totalorder %s21_s25, %s251_s10  ;;  %p257_p5 = scmp.lt.s32.totalorder %s251_s10, %s251_s10 }
   0xc   :  { %p258_p6 = por %p257_p5, %p256_p4 }
   0xe   :  { %p259_p7 = pnand %p258_p6, %p252_p3 }
  0x10   :  { %262 = shalt.err (!%p259_p7)
}
  0x11   :  { %s314_s11 = smov 128   ;;  %s315_s12 = smov 8  }
  0x12   :  { %26 = dma.hbm_to_vmem [thread:$0]  %s419_s0, 256, %s21_s25, [#allocation3], %s314_s11, %s314_s11, %s315_s12  }
  0x13   :  { %s316_s15 = smov [#allocation5]   ;;  %s263_s19 = scalar_lea.hbm %s423_s4, 32 }
  0x14   :  { %s39_s16 = sshll.u32 %s316_s15, 4  ;;  %p264_p8 = scmp.ne.s32.totalorder %s423_s4, %s263_s19  ;;  %s40_s16 = int_to_ptr.vmem [resolvable:$true] %s39_s16 }
  0x15   :  { %p267_p9 = scmp.lt.u32.totalorder %s263_s19, %s423_s4 }
  0x17   :  { %p269_p10 = pnand %p267_p9, %p264_p8 }
  0x19   :  { %272 = shalt.err (!%p269_p10)
}
  0x1a   :  { %s273_s24 = scalar_lea.vmem %s40_s16, 32  ;;  %p278_p12 = scmp.lt.s32.totalorder %s40_s16, %s40_s16 }
  0x1b   :  { %p274_p11 = scmp.ne.s32.totalorder %s40_s16, %s273_s24  ;;  %p279_p13 = scmp.lt.s32.totalorder %s273_s24, %s273_s24 }
  0x1d   :  { %p280_p0 = por %p279_p13, %p278_p12 }
  0x1f   :  { %p281_p1 = pnand %p280_p0, %p274_p11 }
  0x21   :  { %284 = shalt.err (!%p281_p1)
}
  0x22   :  { %42 = dma.hbm_to_vmem [thread:$0]  %s423_s4, 32, %s40_s16, [#allocation6]  }
  0x23   :  { %307 = dma.done.wait [#allocation3], 256  }
  0x24   :  { %308 = vsyncadd [#allocation3], 4294967040 }
  0x25   :  { %309 = dma.done.wait [#allocation6], 32  }
  0x26   :  { %310 = vsyncadd [#allocation6], 4294967264  ;;  %v53_v0 = vld [vmem:[%s420_s1] sm:$0x3]  ;;  %vm58_vm0 = vcmask 254976   ;;  %v78_v17 = vlaneseq  ;;  %vm110_vm1 = vcmask 261120  }
  0x27   :  { %v54_v1 = vld [vmem:[%s421_s2] sm:$0x3]  ;;  %v317_v15 = vmov 1966171168   ;;  %v318_v35 = vmov 0   ;;  %vm148_vm2 = vcmask 1041409  }
  0x28   :  { %v56_v2 = vld [vmem:[%s422_s3] sm:$0x3]  ;;  %v55_v3 = vadd.f32 %v54_v1, %v53_v0  ;;  %v76_v16 = vunpack.c.l.s4 %v317_v15  ;;  %v79_v19 = vshrl.u32 %v78_v17, 7  ;;  %233 = vset.pattern.permute.xlu1 %v318_v35  ;;  %234 = vset.pattern.permute.xlu0 %v318_v35  ;;  %v139_v41 = vand.u32 127, %v78_v17  ;;  %v128_v44 = vld [vmem:[#allocation5] sm:$0x3] }
  0x29   :  { %v224_v11 = vld [vmem:[%s425_s6] ss:$0 sm:$0xff]  ;;  %vm129_vm3 = vcmp.ne.f32.partialorder %v128_v44, 0.0  ;;  %vm152_vm4 = vcmask 58368   ;;  %v179_v62 = vld [vmem:[#allocation2 + $0x8] sm:$0xff]  ;;  %s320_s6 = smov [#allocation7]  }
  0x2a   :  { %v57_v4 = vadd.f32 %v56_v2, %v55_v3  ;;  %v77_v18 = vunpack.c.0.s8 %v76_v16  ;;  %v100_v24 = vsub.s32 0, %v79_v19  ;;  %v97_v27 = vld [vmem:[%s424_s5] sm:$0xff]  ;;  %v142_v43 = vsub.s32 %v139_v41, %v79_v19  ;;  %s319_s5 = smov 32   ;;  %s214_s9 = sshll.u32 %s320_s6, 4  ;;  %s215_s9 = int_to_ptr.vmem [resolvable:$true] %s214_s9 }
  0x2b   :  { %v173_v57 = vsub.s32 1, %v79_v19  ;;  %v178_v63 = vld [vmem:[#allocation2] sm:$0xff]  ;;  %vm205_vm5 = vcmask 326656   ;;  %s285_s10 = scalar_lea.vmem %s215_s9, 32  ;;  %p290_p3 = scmp.lt.s32.totalorder %s215_s9, %s215_s9 }
  0x2c   :  { %v59_v5 = vsel %vm58_vm0, %v57_v4, 0.0  ;;  %v80_v20 = vsub.s32 %v77_v18, %v79_v19  ;;  %p286_p2 = scmp.ne.s32.totalorder %s215_s9, %s285_s10  ;;  %p291_p4 = scmp.lt.s32.totalorder %s285_s10, %s285_s10 }
  0x2d   :  { %60 = vadd.xlane.f32.xlu0 %v59_v5 }
  0x2e   :  { %p292_p5 = por %p291_p4, %p290_p3 }
  0x30   :  { %p293_p6 = pnand %p292_p5, %p286_p2 }
  0xba   :  { %v61_v6 = vpop.xlane.xlu0 %60 }
  0xbb   :  { %v63_v7 = vmul.f32 0.03125, %v61_v6 }
  0xbd   :  { %v64_v8 = vsub.f32 %v57_v4, %v63_v7 }
  0xbf   :  { %v65_v9 = vmul.f32 %v64_v8, %v64_v8 }
  0xc1   :  { %v66_v10 = vsel %vm58_vm0, %v65_v9, 0.0 }
  0xc2   :  { %67 = vadd.xlane.f32.xlu0 %v66_v10 }
  0xd8   :  { %123 = vbcast.lane.b32.xlu0 %v224_v11, 256 }
 0x14f   :  { %v68_v12 = vpop.xlane.xlu0 %67 }
 0x150   :  { %v69_v13 = vmul.f32 0.03125, %v68_v12 }
 0x152   :  { %v70_v14 = vadd.f32 1e-05, %v69_v13 }
 0x153   :  { %v124_v36 = vpop.permute.xlu0 %123 }
 0x154   :  { %235 = vrsqrt.f32 %v70_v14 }
 0x15e   :  { %v236_v21 = vpop.eup %235 }
 0x15f   :  { %v72_v22 = vmul.f32 %v236_v21, %v64_v8 }
 0x161   :  { %v81_v23 = vrot.slane %v72_v22, %v80_v20 }
 0x163   :  { %v89_v25 = vrot.slane %v81_v23, %v80_v20  ;;  %v82_v26 = vcombine.high %v81_v23, %v81_v23 }
 0x165   :  { %v101_v28 = vrot.slane %v89_v25, %v100_v24  ;;  %v96_v29 = vrot.slane %v82_v26, %v80_v20 }
 0x167   :  { %v108_v30 = vmul.f32 %v101_v28, %v97_v27  ;;  %v105_v31 = vrot.slane %v96_v29, %v100_v24 }
 0x169   :  { %v111_v32 = vsel %vm110_vm1, %v108_v30, 0.0  ;;  %v109_v33 = vmul.f32 %v105_v31, %v97_v27 }
 0x16a   :  { %112 = vadd.xlane.f32.xlu1 %v111_v32 }
 0x16b   :  { %v114_v34 = vsel %vm110_vm1, %v109_v33, 0.0 }
 0x16e   :  { %115 = vadd.xlane.f32.xlu1 %v114_v34 }
 0x1f7   :  { %v113_v37 = vpop.xlane.xlu1 %112 }
 0x1f8   :  { %v126_v38 = vadd.f32 %v124_v36, %v113_v37 }
 0x1fa   :  { %133 = vperm.xlu1 %233, %v126_v38  }
 0x1fb   :  { %v116_v39 = vpop.xlane.xlu1 %115 }
 0x1fc   :  { %v127_v40 = vadd.f32 %v124_v36, %v116_v39 }
 0x1fe   :  { %136 = vperm.xlu1 %233, %v127_v40  }
 0x279   :  { %v134_v42 = vpop.permute.xlu1 %133 }
 0x27a   :  { %v143_v46 = vrot.slane %v134_v42, %v142_v43 }
 0x27d   :  { %v137_v45 = vpop.permute.xlu1 %136 }
 0x27e   :  { %v147_v47 = vrot.slane %v137_v45, %v142_v43 }
 0x280   :  { %v149_v48 = vsel %vm148_vm2, %v147_v47, %v143_v46 }
 0x281   :  { %v151_v49 = vsel %vm129_vm3, %v149_v48, 0.0 }
 0x282   :  { %v153_v50 = vsel %vm152_vm4, %v151_v49, -inf }
 0x283   :  { %154 = vmax.xlane.f32.xlu1 %v153_v50 }
 0x310   :  { %v155_v51 = vpop.xlane.xlu1 %154 }
 0x311   :  { %v156_v52 = vsub.f32 %v151_v49, %v155_v51 }
 0x313   :  { %v157_v53 = vmul.f32 1.442695, %v156_v52 }
 0x315   :  { %237 = vpow2.f32 %v157_v53 }
 0x31f   :  { %v238_v54 = vpop.eup %237 }
 0x320   :  { %v159_v55 = vsel %vm152_vm4, %v238_v54, 0.0 }
 0x321   :  { %160 = vadd.xlane.f32.xlu0 %v159_v55 }
 0x3ae   :  { %v161_v56 = vpop.xlane.xlu0 %160 }
 0x3af   :  { %239 = vrcp.f32 %v161_v56 }
 0x3b9   :  { %v240_v58 = vpop.eup %239 }
 0x3ba   :  { %v163_v59 = vmul.f32 %v240_v58, %v238_v54 }
 0x3bc   :  { %v174_v60 = vrot.slane %v163_v59, %v173_v57  ;;  %v167_v61 = vrot.slane %v163_v59, %v100_v24 }
 0x3be   :  { %176 = vbcast.lane.b32.xlu1 %v174_v60, 256  ;;  %169 = vbcast.lane.b32.xlu0 %v167_v61, 256 }
 0x3c2   :  { %201 = vrot.lane.b32.xlu1 %v163_v59, %s319_s5 }
 0x430   :  { %v177_v0 = vpop.permute.xlu1 %176  ;;  %v170_v1 = vpop.permute.xlu0 %169 }
 0x431   :  { %v181_v2 = vmul.f32 %v179_v62, %v177_v0  ;;  %v180_v3 = vmul.f32 %v178_v63, %v170_v1 }
 0x433   :  { %v189_v4 = vsel %vm110_vm1, %v181_v2, 0.0  ;;  %v182_v5 = vsel %vm110_vm1, %v180_v3, 0.0 }
 0x434   :  { %v190_v6 = vrot.slane %v189_v4, 4  ;;  %v183_v7 = vrot.slane %v182_v5, 4  ;;  %v202_v18 = vpop.permute.xlu1 %201 }
 0x436   :  { %v191_v8 = vadd.f32 %v190_v6, %v189_v4  ;;  %v184_v9 = vadd.f32 %v183_v7, %v182_v5 }
 0x438   :  { %v192_v10 = vrot.slane %v191_v8, 2  ;;  %v185_v11 = vrot.slane %v184_v9, 2 }
 0x43a   :  { %v193_v12 = vadd.f32 %v192_v10, %v191_v8  ;;  %v186_v13 = vadd.f32 %v185_v11, %v184_v9 }
 0x43c   :  { %v194_v14 = vrot.slane %v193_v12, 1  ;;  %v187_v15 = vrot.slane %v186_v13, 1 }
 0x43e   :  { %v195_v16 = vadd.f32 %v194_v14, %v193_v12  ;;  %v188_v17 = vadd.f32 %v187_v15, %v186_v13 }
 0x440   :  { %v198_v19 = vsel %vm148_vm2, %v195_v16, %v188_v17 }
 0x441   :  { %v204_v20 = vsel %vm110_vm1, %v198_v19, %v202_v18 }
 0x442   :  { %v206_v21 = vsel %vm205_vm5, %v204_v20, 0.0 }
 0x443   :  { %207 = vst [vmem:[#allocation7] sm:$0x3] %v206_v21 }
 0x444   :  { %296 = shalt.err (!%p293_p6)
}
 0x445   :  { %s297_s13 = scalar_lea.hbm %s426_s7, 32 }
 0x446   :  { %p298_p7 = scmp.ne.s32.totalorder %s426_s7, %s297_s13  ;;  %p301_p8 = scmp.lt.u32.totalorder %s297_s13, %s426_s7 }
 0x448   :  { %p303_p9 = pnand %p301_p8, %p298_p7 }
 0x44a   :  { %306 = shalt.err (!%p303_p9)
}
 0x44b   :  { %217 = dma.vmem_to_hbm [thread:$0]  %s215_s9, 32, %s426_s7, [#allocation4]  }
 0x44c   :  { %311 = dma.done.wait [#allocation4], 32  }
 0x44d   :  { %312 = vsyncadd [#allocation4], 4294967264 }
 0x44e   :  { %221 = vsyncpa [#allocation3], 1 }
 0x44f   :  { %222 = vsyncpa [#allocation6], 1 }
 0x450   :  { %223 = vsyncpa [#allocation4], 1 }

</bundles_post_ra>
